<compile_context>
chip_gen: v6e
topology: v6e:2x2x1
jax: 0.10.0
libtpu: 0.0.40
codegen_flags: <defaults>
</compile_context>

<pallas_src>
import functools

import jax
import jax.numpy as jnp
from jax.experimental import pallas as pl
from jax.experimental.pallas import tpu as pltpu

INPUT_SIZE = 38
HIDDEN_SIZE = 15
OUTPUT_SIZE = 7


def _mlp_kernel(x_ref, w1_ref, b1_ref, w2_ref, b2_ref, o_ref, *, compute_dtype):
    # One batch tile per grid step; weights/biases are VMEM-resident across steps.
    x = x_ref[...]                                   # (TB, INPUT_SIZE)
    w1 = w1_ref[...]                                 # (INPUT_SIZE, HIDDEN_SIZE)
    b1 = b1_ref[...]                                 # (1, HIDDEN_SIZE)
    w2 = w2_ref[...]                                 # (HIDDEN_SIZE, OUTPUT_SIZE)
    b2 = b2_ref[...]                                 # (1, OUTPUT_SIZE)

    if compute_dtype != jnp.float32:
        x = x.astype(compute_dtype)
        w1 = w1.astype(compute_dtype)
        w2 = w2.astype(compute_dtype)

    h = jnp.dot(x, w1, preferred_element_type=jnp.float32) + b1   # fc1
    h = jnp.maximum(h, 0.0)                                       # ReLU
    if compute_dtype != jnp.float32:
        h = h.astype(compute_dtype)
    y = jnp.dot(h, w2, preferred_element_type=jnp.float32) + b2   # fc2
    o_ref[...] = y.astype(o_ref.dtype)


def net_forward(x, w1, b1, w2, b2, *, block_b=None, bf16_matmul=False):
    """Pallas forward for Net.

    x:  (B, INPUT_SIZE) float32
    w1: (INPUT_SIZE, HIDDEN_SIZE)  (already transposed from PyTorch layout)
    b1: (HIDDEN_SIZE,)
    w2: (HIDDEN_SIZE, OUTPUT_SIZE)
    b2: (OUTPUT_SIZE,)
    """
    B = x.shape[0]

    if block_b is None:
        # Big tile (4096 rows) so DMA per grid step beats the ~0.35 us fixed
        # overhead; whole batch (sublane-rounded) for small inputs.
        # Per-generation tuning (pass block_b explicitly):
        #   v5e: 2048-4096, v6e: 4096-8192, v7x: 8192-16384 (64 MiB VMEM cap).
        block_b = min(4096, ((B + 7) // 8) * 8)
    # Sublane-align (second-to-last dim packs in units of 8).
    block_b = max(8, ((block_b + 7) // 8) * 8)

    # No padding / slicing: Pallas masks the ragged last block.
    grid = (pl.cdiv(B, block_b),)

    b1_2d = b1.reshape(1, HIDDEN_SIZE)
    b2_2d = b2.reshape(1, OUTPUT_SIZE)

    compute_dtype = jnp.bfloat16 if bf16_matmul else jnp.float32
    kernel = functools.partial(_mlp_kernel, compute_dtype=compute_dtype)

    weight_bytes = 4 * (w1.size + b1.size + w2.size + b2.size)
    cost = pl.CostEstimate(
        flops=2 * B * (INPUT_SIZE * HIDDEN_SIZE + HIDDEN_SIZE * OUTPUT_SIZE),
        transcendentals=0,
        bytes_accessed=4 * B * (INPUT_SIZE + OUTPUT_SIZE) + weight_bytes,
    )

    return pl.pallas_call(
        kernel,
        out_shape=jax.ShapeDtypeStruct((B, OUTPUT_SIZE), jnp.float32),
        grid_spec=pl.GridSpec(
            grid=grid,
            in_specs=[
                # x streams tile-by-tile over the batch.
                pl.BlockSpec((block_b, INPUT_SIZE), lambda i: (i, 0)),
                # Weights / biases: same block every step -> VMEM-resident.
                pl.BlockSpec((INPUT_SIZE, HIDDEN_SIZE), lambda i: (0, 0)),
                pl.BlockSpec((1, HIDDEN_SIZE), lambda i: (0, 0)),
                pl.BlockSpec((HIDDEN_SIZE, OUTPUT_SIZE), lambda i: (0, 0)),
                pl.BlockSpec((1, OUTPUT_SIZE), lambda i: (0, 0)),
            ],
            out_specs=pl.BlockSpec((block_b, OUTPUT_SIZE), lambda i: (i, 0)),
        ),
        compiler_params=pltpu.CompilerParams(
            # Independent batch tiles -> megacore-shard them.
            dimension_semantics=("parallel",),
            # Headroom for large tiles on v6e/v7x; still < v7x's 64 MiB physical.
            vmem_limit_bytes=48 * 1024 * 1024,
        ),
        cost_estimate=cost,
    )(x, w1, b1_2d, w2, b2_2d)


def init_params(key):
    """nn.Linear default init: U(-1/sqrt(fan_in), +1/sqrt(fan_in))."""
    k1, k2, k3, k4 = jax.random.split(key, 4)
    bound1 = 1.0 / jnp.sqrt(jnp.float32(INPUT_SIZE))
    bound2 = 1.0 / jnp.sqrt(jnp.float32(HIDDEN_SIZE))
    w1 = jax.random.uniform(k1, (INPUT_SIZE, HIDDEN_SIZE), jnp.float32, -bound1, bound1)
    b1 = jax.random.uniform(k2, (HIDDEN_SIZE,), jnp.float32, -bound1, bound1)
    w2 = jax.random.uniform(k3, (HIDDEN_SIZE, OUTPUT_SIZE), jnp.float32, -bound2, bound2)
    b2 = jax.random.uniform(k4, (OUTPUT_SIZE,), jnp.float32, -bound2, bound2)
    return w1, b1, w2, b2


if __name__ == "__main__":
    key = jax.random.PRNGKey(0)
    k_x, k_p = jax.random.split(key)

    # B=20 exercises both ragged-tail paths:
    #  * block_b=8  -> grid=3, last block has only 4 valid rows (masked writes)
    #  * default    -> block_b=24 > B, single partial block
    B = 20
    x = jax.random.normal(k_x, (B, INPUT_SIZE), jnp.float32)
    w1, b1, w2, b2 = init_params(k_p)

    out = jax.block_until_ready(net_forward(x, w1, b1, w2, b2, block_b=8))
    out2 = jax.block_until_ready(net_forward(x, w1, b1, w2, b2))

    # Pure-JAX reference of the same math.
    ref = jnp.maximum(x @ w1 + b1, 0.0) @ w2 + b2
    assert out.shape == (B, OUTPUT_SIZE)
    assert jnp.allclose(out, ref, atol=1e-5, rtol=1e-5)
    assert jnp.allclose(out2, ref, atol=1e-5, rtol=1e-5)

    print("KERNEL_OK")
</pallas_src>

<mosaic_0001>
module attributes {stable_mosaic.version = 11 : i64} {
  func.func @_mlp_kernel(%arg0: i32, %arg1: memref<8x38xf32, #tpu.memory_space<vmem>>, %arg2: memref<38x15xf32, #tpu.memory_space<vmem>>, %arg3: memref<1x15xf32, #tpu.memory_space<vmem>>, %arg4: memref<15x7xf32, #tpu.memory_space<vmem>>, %arg5: memref<1x7xf32, #tpu.memory_space<vmem>>, %arg6: memref<8x7xf32, #tpu.memory_space<vmem>>) attributes {dimension_semantics = [#tpu.dimension_semantics<parallel>], iteration_bounds = array<i64: 3>, scalar_prefetch = 0 : i64, scratch_operands = 0 : i64, tpu.core_type = #tpu.core_type<tc>, window_params = [{transform_indices = @transform_0, window_bounds = array<i64: 8, 38>}, {pipeline_mode = #tpu.pipeline_mode<synchronous>, transform_indices = @transform_1, window_bounds = array<i64: 38, 15>}, {pipeline_mode = #tpu.pipeline_mode<synchronous>, transform_indices = @transform_2, window_bounds = array<i64: 1, 15>}, {pipeline_mode = #tpu.pipeline_mode<synchronous>, transform_indices = @transform_3, window_bounds = array<i64: 15, 7>}, {pipeline_mode = #tpu.pipeline_mode<synchronous>, transform_indices = @transform_4, window_bounds = array<i64: 1, 7>}, {transform_indices = @transform_5, window_bounds = array<i64: 8, 7>}]} {
    %c0 = arith.constant 0 : index
    %c0_0 = arith.constant 0 : index
    %0 = vector.load %arg1[%c0, %c0_0] : memref<8x38xf32, #tpu.memory_space<vmem>>, vector<8x38xf32>
    %c0_1 = arith.constant 0 : index
    %c0_2 = arith.constant 0 : index
    %1 = vector.load %arg2[%c0_1, %c0_2] : memref<38x15xf32, #tpu.memory_space<vmem>>, vector<38x15xf32>
    %c0_3 = arith.constant 0 : index
    %c0_4 = arith.constant 0 : index
    %2 = vector.load %arg3[%c0_3, %c0_4] : memref<1x15xf32, #tpu.memory_space<vmem>>, vector<1x15xf32>
    %c0_5 = arith.constant 0 : index
    %c0_6 = arith.constant 0 : index
    %3 = vector.load %arg4[%c0_5, %c0_6] : memref<15x7xf32, #tpu.memory_space<vmem>>, vector<15x7xf32>
    %c0_7 = arith.constant 0 : index
    %c0_8 = arith.constant 0 : index
    %4 = vector.load %arg5[%c0_7, %c0_8] : memref<1x7xf32, #tpu.memory_space<vmem>>, vector<1x7xf32>
    %cst = arith.constant dense<0.000000e+00> : vector<8x15xf32>
    %5 = tpu.matmul %0, %1, %cst {dimension_numbers = #tpu.dot_dimension_numbers<[1], [0], [0], [1], [0, 0, 1, 1], [], []>} : vector<8x38xf32>, vector<38x15xf32>, vector<8x15xf32> -> vector<8x15xf32>
    %6 = vector.broadcast %2 : vector<1x15xf32> to vector<8x15xf32>
    %7 = arith.addf %5, %6 : vector<8x15xf32>
    %cst_9 = arith.constant 0.000000e+00 : f32
    %8 = vector.broadcast %cst_9 : f32 to vector<8x15xf32>
    %9 = arith.maximumf %7, %8 : vector<8x15xf32>
    %cst_10 = arith.constant dense<0.000000e+00> : vector<8x7xf32>
    %10 = tpu.matmul %9, %3, %cst_10 {dimension_numbers = #tpu.dot_dimension_numbers<[1], [0], [0], [1], [0, 0, 1, 1], [], []>} : vector<8x15xf32>, vector<15x7xf32>, vector<8x7xf32> -> vector<8x7xf32>
    %11 = vector.broadcast %4 : vector<1x7xf32> to vector<8x7xf32>
    %12 = arith.addf %10, %11 : vector<8x7xf32>
    %c0_11 = arith.constant 0 : index
    %c0_12 = arith.constant 0 : index
    %13 = vector.load %arg6[%c0_11, %c0_12] : memref<8x7xf32, #tpu.memory_space<vmem>>, vector<8x7xf32>
    tpu.vector_store %arg6[%c0_11, %c0_12], %12 {strides = array<i32>} : memref<8x7xf32, #tpu.memory_space<vmem>>, vector<8x7xf32>,
    return
  }
  func.func @transform_0(%arg0: i32) -> (i32, i32) {
    %c0_i32 = arith.constant 0 : i32
    %c0_i32_0 = arith.constant 0 : i32
    return %arg0, %c0_i32 : i32, i32
  }
  func.func @transform_1(%arg0: i32) -> (i32, i32) {
    %c0_i32 = arith.constant 0 : i32
    %c0_i32_0 = arith.constant 0 : i32
    %c0_i32_1 = arith.constant 0 : i32
    return %c0_i32, %c0_i32_0 : i32, i32
  }
  func.func @transform_2(%arg0: i32) -> (i32, i32) {
    %c0_i32 = arith.constant 0 : i32
    %c0_i32_0 = arith.constant 0 : i32
    %c0_i32_1 = arith.constant 0 : i32
    return %c0_i32, %c0_i32_0 : i32, i32
  }
  func.func @transform_3(%arg0: i32) -> (i32, i32) {
    %c0_i32 = arith.constant 0 : i32
    %c0_i32_0 = arith.constant 0 : i32
    %c0_i32_1 = arith.constant 0 : i32
    return %c0_i32, %c0_i32_0 : i32, i32
  }
  func.func @transform_4(%arg0: i32) -> (i32, i32) {
    %c0_i32 = arith.constant 0 : i32
    %c0_i32_0 = arith.constant 0 : i32
    %c0_i32_1 = arith.constant 0 : i32
    return %c0_i32, %c0_i32_0 : i32, i32
  }
  func.func @transform_5(%arg0: i32) -> (i32, i32) {
    %c0_i32 = arith.constant 0 : i32
    %c0_i32_0 = arith.constant 0 : i32
    return %arg0, %c0_i32 : i32, i32
  }
}

</mosaic_0001>

<bundles_post_ra>
// kernel: tpu_custom_call.1
= control target key start
LH: loop header
LB: loop body
LE: loop exit
PB: predicated region body
PF: predicated region fallthrough
CT: control target
= control target key end

     0   :  { %s548_s18 = smov 0   ;;  %s595_s0 = inlined_call_operand.vmem [shape: f32[20,38], index: 0, kind: input, shape index: {}]   ;;  %s596_s1 = inlined_call_operand.vmem [shape: f32[38,15], index: 1, kind: input, shape index: {}]   ;;  %s597_s2 = inlined_call_operand.vmem [shape: f32[1,15], index: 2, kind: input, shape index: {}]   ;;  %s598_s3 = inlined_call_operand.vmem [shape: f32[15,7], index: 3, kind: input, shape index: {}]   ;;  %s599_s4 = inlined_call_operand.vmem [shape: f32[1,7], index: 4, kind: input, shape index: {}]   ;;  %s600_s5 = inlined_call_operand.vmem [shape: f32[20,7], index: 5, kind: output, shape index: {}]  }
   0x1 LB: > { %s454_s19 = sadd.s32 4294967295, %s514_s18   ;;  %p458_p0 = scmp.ge.s32.totalorder %s514_s18, 1  ;;  %s514_s18 = sphi %s548_s18, %s15_s18  }
   0x2   : > { %p186_p1 = scmp.lt.s32.totalorder %s514_s18, 4 }
   0x4   : > { %p187_p2 = pnand %p458_p0, %p186_p1 }
   0x5   : > { %p212_p3 = scmp.lt.s32.totalorder (!%p187_p2), %s454_s19, 2 }
   0x6   : > { %190 = sbr.rel (%p187_p2) target bundleno = 415 (0x19f), region = 40 }
   0xb   : > { %v225_v0 = vld [vmem:[%s596_s1 + $0x20] sm:$0x3f]  ;;  %vm240_vm0 = vcmask 1045504   ;;  %v516_v1 = vmov 0.0   ;;  %v224_v2 = vld [vmem:[%s596_s1 + $0x18] sm:$0xff]  ;;  %vm517_vm1 = vmmov 0  }
   0xc   : > { %478 = vmatprep.subr.mxu0 %v516_v1  ;;  %491 = vmatprep.subr.mxu1 %v516_v1  ;;  %v223_v3 = vld [vmem:[%s596_s1 + $0x10] sm:$0xff]  ;;  %s602_s19 = smov (!%p212_p3, %s454_s19), 2  ;;  %v222_v4 = vld [vmem:[%s596_s1 + $0x8] sm:$0xff]  ;;  %v221_v5 = vld [vmem:[%s596_s1] sm:$0xff]  ;;  %vm236_vm2 = vcmask 310272   ;;  %vm325_vm3 = vcmask 1046528  }
   0xd   : > { %479 = vmatpush3.msk.msra.mxu0 %vm240_vm0, %v225_v0  ;;  %488 = vmatprep.mubr.msk.f32.mxu0 %vm517_vm1, %v516_v1  ;;  %s459_s28 = sshll.u32 %s602_s19, 3  ;;  %v228_v7 = vld [vmem:[%s598_s3 + $0x8] sm:$0x7f]  ;;  %v227_v8 = vld [vmem:[%s598_s3] sm:$0xff]  ;;  %vm321_vm4 = vcmask 121856   ;;  %vm399_vm5 = vcmask 56320  }
   0xe   : > { %480 = vmatprep.subr.mxu0 %v516_v1  ;;  %495 = vmatprep.mubr.msk.f32.mxu1 %vm517_vm1, %v516_v1  ;;  %s215_s6 = scalar_lea.vmem %s595_s0, %s459_s28  ;;  %v461_v9 = vld [vmem:[%s597_s2] ss:$0 sm:$0xff]  ;;  %s219_s20 = scalar_lea.vmem %s600_s5, %s459_s28 }
   0xf   : > { %481 = vmatpush3.msra.mxu0 %v224_v2  ;;  %v220_v6 = vld [vmem:[%s215_s6] sm:$0xff]  ;;  %492 = vmatpush3.msk.msra.mxu1 %vm325_vm3, %v228_v7 }
  0x10   : > { %482 = vmatprep.subr.mxu0 %v516_v1  ;;  %493 = vmatprep.subr.mxu1 %v516_v1  ;;  %v464_v14 = vld [vmem:[%s599_s4] ss:$0 sm:$0xff] }
  0x11   : > { %483 = vmatpush3.msra.mxu0 %v223_v3  ;;  %494 = vmatpush3.msra.mxu1 %v227_v8 }
  0x12   : > { %484 = vmatprep.subr.mxu0 %v516_v1 }
  0x13   : > { %485 = vmatpush3.msra.mxu0 %v222_v4 }
  0x14   : > { %486 = vmatprep.subr.mxu0 %v516_v1 }
  0x15   : > { %487 = vmatpush3.msra.mxu0 %v221_v5 }
  0x16   : > { %489 = vmatmul.mubr.msk.f32.vlgmr.msra.gmra.mxu0 %vm236_vm2, %v220_v6 }
  0xd6   : > { %v310_v10 = vpop.f32.mrf.mxu0 }
  0xd7   : > { %v311_v11 = vadd.f32 %v461_v9, %v310_v10 }
  0xd8   : > { %v490_v12 = vpop.f32.mrf.mxu0 }
  0xd9   : > { %v314_v13 = vmax.f32 %v311_v11, 0.0 }
  0xdb   : > { %496 = vmatmul.mubr.msk.f32.vlgmr.msra.gmra.mxu1 %vm321_vm4, %v314_v13 }
 0x19b   : > { %v395_v15 = vpop.f32.mrf.mxu1 }
 0x19c   : > { %v396_v16 = vadd.f32 %v464_v14, %v395_v15 }
 0x19d   : > { %v497_v17 = vpop.f32.mrf.mxu1 }
 0x19e   : > { %400 = vst.msk [vmem:[%s219_s20] sm:$0xff] %vm399_vm5, %v396_v16 }
 0x19f PF: > { %s15_s18 = sadd.s32 1, %s514_s18  }
 0x1a0   : > { %p12_p4 = scmp.ge.s32.totalorder %s15_s18, 5  }
 0x1a2   :  { %14 = sbr.rel (!%p12_p4) target bundleno = 1 (0x1), region = 70 }

</bundles_post_ra>
